<compile_context>
chip_gen: v5e
topology: v5e:2x2
jax: 0.10.0
libtpu: 0.0.40
codegen_flags: <defaults>
</compile_context>

<pallas_src>
import functools

import jax
import jax.numpy as jnp
from jax.experimental import pallas as pl
from jax.experimental.pallas import tpu as pltpu


def _round_up(n, m):
    return ((n + m - 1) // m) * m


# ----------------------------------------------------------------------------
# Kernels
# ----------------------------------------------------------------------------
def _swiglu_compute(x_ref, w12_ref, w3_ref, th, gate_dtype):
    """One grid step: silu(x@W1_h) * (x@W2_h) @ W3_h, f32 accumulation."""
    x = x_ref[...]
    # Single fused MXU pass for gate + up projections ([W1_h | W2_h] tile).
    x12 = jnp.dot(x, w12_ref[...], preferred_element_type=jnp.float32)
    x1 = x12[:, :th]          # gate projection  (lane-aligned: th % 128 == 0)
    x2 = x12[:, th:]          # up projection
    if gate_dtype != jnp.float32:
        # Optional bf16 gate math (v6e/v7x): halves VPU/EUP + spill traffic.
        x1 = x1.astype(gate_dtype)
        x2 = x2.astype(gate_dtype)
    g = (x1 * jax.nn.sigmoid(x1)) * x2
    return jnp.dot(g.astype(w3_ref.dtype), w3_ref[...],
                   preferred_element_type=jnp.float32)


def _swiglu_kernel_f32out(x_ref, w12_ref, w3_ref, o_ref, *, th, gate_dtype):
    # f32 output: accumulate directly into the VMEM-resident output block
    # (its block index is constant along the hidden axis) -- no acc scratch.
    @pl.when(pl.program_id(1) == 0)
    def _():
        o_ref[...] = jnp.zeros_like(o_ref)

    o_ref[...] += _swiglu_compute(x_ref, w12_ref, w3_ref, th, gate_dtype)


def _swiglu_kernel_acc(x_ref, w12_ref, w3_ref, o_ref, acc_ref, *, th,
                       gate_dtype):
    # Non-f32 output: classic resident f32 accumulator over the hidden axis.
    h = pl.program_id(1)

    @pl.when(h == 0)
    def _():
        acc_ref[...] = jnp.zeros_like(acc_ref)

    acc_ref[...] += _swiglu_compute(x_ref, w12_ref, w3_ref, th, gate_dtype)

    @pl.when(h == pl.num_programs(1) - 1)
    def _():
        o_ref[...] = acc_ref[...].astype(o_ref.dtype)


# ----------------------------------------------------------------------------
# Device-aware tile selection
# ----------------------------------------------------------------------------
def _tpu_generation():
    try:
        kind = jax.devices()[0].device_kind.lower()
    except Exception:  # pragma: no cover - defensive
        return "unknown"
    if "7" in kind:
        return "v7x"
    if "v6" in kind:
        return "v6e"
    if "v5" in kind and ("lite" in kind or "5e" in kind):
        return "v5e"
    return "unknown"


# (tm_target, th_target, vmem_budget_bytes, vmem_limit_bytes)
_GEN_CONFIG = {
    # v7x: 64 MiB VMEM/TC -> smaller th, ~50 MiB budget; tm large enough to be
    # compute-bound even though both TCs re-stream weights independently.
    "v7x": (512, 256, 50 * 2**20, 56 * 2**20),
    # v6e: needs ~640 flop/byte -> big token tile; plenty of VMEM (128 MiB).
    "v6e": (1024, 512, 96 * 2**20, 100 * 2**20),
    # v5e: already near MXU roofline at modest tiles.
    "v5e": (256, 512, 96 * 2**20, 100 * 2**20),
    # Unknown generation: conservative tiles + limit that fits any chip.
    "unknown": (256, 256, 44 * 2**20, 64 * 2**20),
}


def _vmem_bytes(tm, th, d_pad, w_itemsize, out_itemsize, use_acc):
    # Double-buffered input/output blocks + optional f32 accumulator scratch.
    x_b = 2 * tm * d_pad * w_itemsize
    w12_b = 2 * d_pad * (2 * th) * w_itemsize
    w3_b = 2 * th * d_pad * w_itemsize
    o_b = 2 * tm * d_pad * out_itemsize
    acc_b = tm * d_pad * 4 if use_acc else 0
    return x_b + w12_b + w3_b + o_b + acc_b


def _fit_th(th, h_pad):
    th = min(th, h_pad)
    th = max(128, (th // 128) * 128)
    while h_pad % th != 0:
        th -= 128
    return th


def select_tiles(M, D_pad, H_pad, w_itemsize, out_itemsize, use_acc):
    """Pick (tm, th, vmem_limit_bytes) for the current TPU generation."""
    tm_t, th_t, budget, vmem_limit = _GEN_CONFIG[_tpu_generation()]
    tm = max(16, min(_round_up(tm_t, 16), _round_up(M, 16)))

    # Fast path: whole (fused) weights fit the VMEM budget -> single hidden
    # tile; weights are streamed from HBM exactly once for the whole call.
    if _vmem_bytes(tm, H_pad, D_pad, w_itemsize, out_itemsize,
                   use_acc) <= budget:
        return tm, H_pad, vmem_limit

    th = _fit_th(th_t, H_pad)
    while th > 128 and _vmem_bytes(tm, th, D_pad, w_itemsize, out_itemsize,
                                   use_acc) > budget:
        th = _fit_th(th // 2, H_pad)
    while tm > 16 and _vmem_bytes(tm, th, D_pad, w_itemsize, out_itemsize,
                                  use_acc) > budget:
        tm = max(16, ((tm // 2) // 16) * 16)
    return tm, th, vmem_limit


# ----------------------------------------------------------------------------
# Weight preparation (hoist to model init in a real model)
# ----------------------------------------------------------------------------
def prepare_ffn_weights(w1, w2, w3, *, th, compute_dtype=jnp.bfloat16):
    """Transpose / pad / cast weights into the kernel layout ONCE.

    w1, w2 : [H, D]   (PyTorch nn.Linear layout: [out, in])
    w3     : [D, H]
    Returns:
      w12 : [D_pad, 2*H_pad], per-hidden-tile interleave [W1_tile_h | W2_tile_h]
      w3t : [H_pad, D_pad]
    """
    H, D = w1.shape
    D_pad = _round_up(D, 128)
    H_pad = _round_up(H, 128)
    assert H_pad % th == 0, (H_pad, th)
    n_h = H_pad // th

    w1p = jnp.zeros((D_pad, H_pad), compute_dtype).at[:D, :H].set(
        w1.T.astype(compute_dtype))
    w2p = jnp.zeros((D_pad, H_pad), compute_dtype).at[:D, :H].set(
        w2.T.astype(compute_dtype))
    # Tile-interleaved fusion: columns [h*2*th, h*2*th+th) = W1 tile h,
    # columns [h*2*th+th, (h+1)*2*th) = W2 tile h.
    w12 = jnp.concatenate(
        [w1p.reshape(D_pad, n_h, th), w2p.reshape(D_pad, n_h, th)],
        axis=2).reshape(D_pad, 2 * H_pad)
    w3t = jnp.zeros((H_pad, D_pad), compute_dtype).at[:H, :D].set(
        w3.T.astype(compute_dtype))
    return w12, w3t


# ----------------------------------------------------------------------------
# Pallas-call wrapper on prepared weights
# ----------------------------------------------------------------------------
def ffn_swish_glu_prepared(x, w12, w3t, *, tm, th, vmem_limit_bytes,
                           gate_dtype=jnp.float32):
    orig_shape = x.shape
    D = orig_shape[-1]
    x2d = x.reshape(-1, D)
    M = x2d.shape[0]
    out_dtype = x.dtype
    compute_dtype = w12.dtype
    H_pad, D_pad = w3t.shape
    assert H_pad % th == 0, (H_pad, th)

    tm = max(16, min(tm, _round_up(M, 16)))
    M_pad = _round_up(M, tm)

    # Only pad/copy x when necessary; otherwise a pure cast.
    if M_pad == M and D_pad == D:
        xp = x2d.astype(compute_dtype)
    else:
        xp = jnp.zeros((M_pad, D_pad), compute_dtype).at[:M, :D].set(
            x2d.astype(compute_dtype))

    grid = (M_pad // tm, H_pad // th)
    use_acc = out_dtype != jnp.float32

    w_itemsize = jnp.dtype(compute_dtype).itemsize
    out_itemsize = jnp.dtype(out_dtype).itemsize
    weight_bytes = (w12.size + w3t.size) * w_itemsize
    cost = pl.CostEstimate(
        flops=6 * M_pad * D_pad * H_pad,          # 3 matmuls, 2*M*D*H each
        transcendentals=M_pad * H_pad,            # sigmoid in SiLU
        # Weights are re-streamed once per token tile.
        bytes_accessed=(xp.size * w_itemsize
                        + weight_bytes * grid[0]
                        + M_pad * D_pad * out_itemsize),
    )

    in_specs = [
        pl.BlockSpec((tm, D_pad), lambda i, h: (i, 0)),       # x tile
        pl.BlockSpec((D_pad, 2 * th), lambda i, h: (0, h)),   # fused [W1|W2]
        pl.BlockSpec((th, D_pad), lambda i, h: (h, 0)),       # W3^T tile
    ]
    out_spec = pl.BlockSpec((tm, D_pad), lambda i, h: (i, 0))

    if use_acc:
        kernel = functools.partial(_swiglu_kernel_acc, th=th,
                                   gate_dtype=gate_dtype)
        scratch = [pltpu.VMEM((tm, D_pad), jnp.float32)]
    else:
        kernel = functools.partial(_swiglu_kernel_f32out, th=th,
                                   gate_dtype=gate_dtype)
        scratch = []

    out = pl.pallas_call(
        kernel,
        out_shape=jax.ShapeDtypeStruct((M_pad, D_pad), out_dtype),
        grid_spec=pltpu.PrefetchScalarGridSpec(
            num_scalar_prefetch=0,
            grid=grid,
            in_specs=in_specs,
            out_specs=out_spec,
            scratch_shapes=scratch,
        ),
        compiler_params=pltpu.CompilerParams(
            dimension_semantics=("parallel", "arbitrary"),
            vmem_limit_bytes=vmem_limit_bytes,
        ),
        cost_estimate=cost,
    )(xp, w12, w3t)

    return out[:M, :D].reshape(orig_shape)


def ffn_swish_glu(x, w1, w2, w3, *, compute_dtype=jnp.bfloat16,
                  gate_dtype=jnp.float32):
    """SwiGLU FFN: silu(x @ w1.T) * (x @ w2.T) @ w3.T (PyTorch semantics).

    Convenience wrapper: picks device-specific tiles and prepares weights.
    In a real model hoist prepare_ffn_weights() to init time and call
    ffn_swish_glu_prepared() per step.
    """
    D = x.shape[-1]
    H = w1.shape[0]
    M = x.reshape(-1, D).shape[0]
    D_pad = _round_up(D, 128)
    H_pad = _round_up(H, 128)
    use_acc = x.dtype != jnp.float32
    tm, th, vmem_limit = select_tiles(
        M, D_pad, H_pad,
        jnp.dtype(compute_dtype).itemsize, jnp.dtype(x.dtype).itemsize,
        use_acc)
    w12, w3t = prepare_ffn_weights(w1, w2, w3, th=th,
                                   compute_dtype=compute_dtype)
    return ffn_swish_glu_prepared(x, w12, w3t, tm=tm, th=th,
                                  vmem_limit_bytes=vmem_limit,
                                  gate_dtype=gate_dtype)


def ffn_swish_glu_ref(x, w1, w2, w3, compute_dtype=jnp.float32):
    """Pure-JAX reference of the PyTorch forward (optionally bf16 operands)."""
    cd = compute_dtype
    x1 = jnp.dot(x.astype(cd), w1.T.astype(cd),
                 preferred_element_type=jnp.float32)
    x2 = jnp.dot(x.astype(cd), w2.T.astype(cd),
                 preferred_element_type=jnp.float32)
    h = jax.nn.silu(x1) * x2
    out = jnp.dot(h.astype(cd), w3.T.astype(cd),
                  preferred_element_type=jnp.float32)
    return out.astype(x.dtype)


if __name__ == "__main__":
    # Small shapes consistent with the module: batch=2, seq=8, in_dim=32, hidden=64.
    B, S, D, H = 2, 8, 32, 64
    key = jax.random.PRNGKey(0)
    kx, k1, k2, k3 = jax.random.split(key, 4)

    x = jax.random.normal(kx, (B, S, D), dtype=jnp.float32)
    # nn.Linear stores weight as [out, in].
    w1 = jax.random.normal(k1, (H, D), dtype=jnp.float32) * (1.0 / D**0.5)
    w2 = jax.random.normal(k2, (H, D), dtype=jnp.float32) * (1.0 / D**0.5)
    w3 = jax.random.normal(k3, (D, H), dtype=jnp.float32) * (1.0 / H**0.5)

    # f32 activations -> accumulate-directly-into-output kernel path.
    out = ffn_swish_glu(x, w1, w2, w3)
    jax.block_until_ready(out)
    assert out.shape == (B, S, D) and out.dtype == x.dtype

    # Compare against a reference using the same bf16-operand / f32-accum math.
    ref_bf16 = ffn_swish_glu_ref(x.reshape(-1, D), w1, w2, w3,
                                 compute_dtype=jnp.bfloat16).reshape(B, S, D)
    assert jnp.allclose(out, ref_bf16, atol=2e-2, rtol=2e-2), \
        f"mismatch vs bf16 reference: {jnp.max(jnp.abs(out - ref_bf16))}"

    # Sanity-check against the full-f32 PyTorch-equivalent forward.
    ref_f32 = ffn_swish_glu_ref(x.reshape(-1, D), w1, w2, w3).reshape(B, S, D)
    assert jnp.allclose(out, ref_f32, atol=1.5e-1, rtol=1.5e-1), \
        f"mismatch vs f32 reference: {jnp.max(jnp.abs(out - ref_f32))}"

    # bf16 activations -> f32-scratch-accumulator kernel path.
    xb = x.astype(jnp.bfloat16)
    out_b = ffn_swish_glu(xb, w1, w2, w3)
    jax.block_until_ready(out_b)
    assert out_b.shape == (B, S, D) and out_b.dtype == jnp.bfloat16
    ref_b = ffn_swish_glu_ref(xb.reshape(-1, D), w1, w2, w3,
                              compute_dtype=jnp.bfloat16).reshape(B, S, D)
    err = jnp.max(jnp.abs(out_b.astype(jnp.float32) - ref_b.astype(jnp.float32)))
    assert jnp.allclose(out_b.astype(jnp.float32), ref_b.astype(jnp.float32),
                        atol=5e-2, rtol=5e-2), f"mismatch (bf16 path): {err}"

    print("KERNEL_OK")
</pallas_src>

<mosaic_0001>
module attributes {stable_mosaic.version = 11 : i64} {
  func.func @_swiglu_kernel_f32out(%arg0: i32, %arg1: i32, %arg2: memref<16x128xbf16, #tpu.memory_space<vmem>>, %arg3: memref<128x256xbf16, #tpu.memory_space<vmem>>, %arg4: memref<128x128xbf16, #tpu.memory_space<vmem>>, %arg5: memref<16x128xf32, #tpu.memory_space<vmem>>) attributes {dimension_semantics = [#tpu.dimension_semantics<parallel>, #tpu.dimension_semantics<arbitrary>], iteration_bounds = array<i64: 1, 1>, scalar_prefetch = 0 : i64, scratch_operands = 0 : i64, tpu.core_type = #tpu.core_type<tc>, window_params = [{transform_indices = @transform_0, window_bounds = array<i64: 16, 128>}, {transform_indices = @transform_1, window_bounds = array<i64: 128, 256>}, {transform_indices = @transform_2, window_bounds = array<i64: 128, 128>}, {transform_indices = @transform_3, window_bounds = array<i64: 16, 128>}]} {
    %c0_i32 = arith.constant 0 : i32
    %0 = arith.cmpi eq, %arg1, %c0_i32 : i32
    %1 = arith.extui %0 : i1 to i32
    %c0_i32_0 = arith.constant 0 : i32
    %2 = arith.cmpi ne, %1, %c0_i32_0 : i32
    scf.if %2 {
      %cst_12 = arith.constant 0.000000e+00 : f32
      %21 = vector.broadcast %cst_12 : f32 to vector<16x128xf32>
      %c0_13 = arith.constant 0 : index
      %c0_14 = arith.constant 0 : index
      %22 = vector.load %arg5[%c0_13, %c0_14] : memref<16x128xf32, #tpu.memory_space<vmem>>, vector<16x128xf32>
      tpu.vector_store %arg5[%c0_13, %c0_14], %21 {strides = array<i32>} : memref<16x128xf32, #tpu.memory_space<vmem>>, vector<16x128xf32>,
    } else {
    }
    %c0 = arith.constant 0 : index
    %c0_1 = arith.constant 0 : index
    %3 = vector.load %arg5[%c0, %c0_1] : memref<16x128xf32, #tpu.memory_space<vmem>>, vector<16x128xf32>
    %c0_2 = arith.constant 0 : index
    %c0_3 = arith.constant 0 : index
    %4 = vector.load %arg2[%c0_2, %c0_3] : memref<16x128xbf16, #tpu.memory_space<vmem>>, vector<16x128xbf16>
    %c0_4 = arith.constant 0 : index
    %c0_5 = arith.constant 0 : index
    %5 = vector.load %arg3[%c0_4, %c0_5] : memref<128x256xbf16, #tpu.memory_space<vmem>>, vector<128x256xbf16>
    %cst = arith.constant dense<0.000000e+00> : vector<16x256xf32>
    %6 = tpu.matmul %4, %5, %cst {dimension_numbers = #tpu.dot_dimension_numbers<[1], [0], [0], [1], [0, 0, 1, 1], [], []>} : vector<16x128xbf16>, vector<128x256xbf16>, vector<16x256xf32> -> vector<16x256xf32>
    %7 = vector.extract_strided_slice %6 {offsets = [0, 0], sizes = [16, 128], strides = [1, 1]} : vector<16x256xf32> to vector<16x128xf32>
    %8 = vector.extract_strided_slice %6 {offsets = [0, 128], sizes = [16, 128], strides = [1, 1]} : vector<16x256xf32> to vector<16x128xf32>
    %9 = arith.negf %7 : vector<16x128xf32>
    %10 = math.exp %9 : vector<16x128xf32>
    %cst_6 = arith.constant 1.000000e+00 : f32
    %11 = vector.broadcast %cst_6 : f32 to vector<16x128xf32>
    %12 = arith.addf %11, %10 : vector<16x128xf32>
    %13 = arith.divf %11, %12 : vector<16x128xf32>
    %14 = arith.mulf %7, %13 : vector<16x128xf32>
    %15 = arith.mulf %14, %8 : vector<16x128xf32>
    %16 = arith.truncf %15 : vector<16x128xf32> to vector<16x128xbf16>
    %c0_7 = arith.constant 0 : index
    %c0_8 = arith.constant 0 : index
    %17 = vector.load %arg4[%c0_7, %c0_8] : memref<128x128xbf16, #tpu.memory_space<vmem>>, vector<128x128xbf16>
    %cst_9 = arith.constant dense<0.000000e+00> : vector<16x128xf32>
    %18 = tpu.matmul %16, %17, %cst_9 {dimension_numbers = #tpu.dot_dimension_numbers<[1], [0], [0], [1], [0, 0, 1, 1], [], []>} : vector<16x128xbf16>, vector<128x128xbf16>, vector<16x128xf32> -> vector<16x128xf32>
    %19 = arith.addf %3, %18 : vector<16x128xf32>
    %c0_10 = arith.constant 0 : index
    %c0_11 = arith.constant 0 : index
    %20 = vector.load %arg5[%c0_10, %c0_11] : memref<16x128xf32, #tpu.memory_space<vmem>>, vector<16x128xf32>
    tpu.vector_store %arg5[%c0_10, %c0_11], %19 {strides = array<i32>} : memref<16x128xf32, #tpu.memory_space<vmem>>, vector<16x128xf32>,
    return
  }
  func.func @transform_0(%arg0: i32, %arg1: i32) -> (i32, i32) {
    %c0_i32 = arith.constant 0 : i32
    %c0_i32_0 = arith.constant 0 : i32
    return %arg0, %c0_i32 : i32, i32
  }
  func.func @transform_1(%arg0: i32, %arg1: i32) -> (i32, i32) {
    %c0_i32 = arith.constant 0 : i32
    %c0_i32_0 = arith.constant 0 : i32
    return %c0_i32, %arg1 : i32, i32
  }
  func.func @transform_2(%arg0: i32, %arg1: i32) -> (i32, i32) {
    %c0_i32 = arith.constant 0 : i32
    %c0_i32_0 = arith.constant 0 : i32
    return %arg1, %c0_i32 : i32, i32
  }
  func.func @transform_3(%arg0: i32, %arg1: i32) -> (i32, i32) {
    %c0_i32 = arith.constant 0 : i32
    %c0_i32_0 = arith.constant 0 : i32
    return %arg0, %c0_i32 : i32, i32
  }
}

</mosaic_0001>

<bundles_post_ra>
// kernel: tpu_custom_call.1
= control target key start
LH: loop header
LB: loop body
LE: loop exit
PB: predicated region body
PF: predicated region fallthrough
CT: control target
= control target key end

     0   :  { %8 = vsyncpa [#allocation3], 0  ;;  %s639_s0 = inlined_call_operand.hbm [shape: bf16[16,128], index: 0, kind: input, shape index: {}]   ;;  %s640_s1 = inlined_call_operand.hbm [shape: bf16[128,256], index: 1, kind: input, shape index: {}]   ;;  %s641_s2 = inlined_call_operand.hbm [shape: bf16[128,128], index: 2, kind: input, shape index: {}]   ;;  %s642_s3 = inlined_call_operand.hbm [shape: f32[16,128], index: 3, kind: output, shape index: {}]  }
   0x1   :  { %9 = vsyncpa [#allocation6], 0  ;;  %s28_s14 = sshll.u32 %s640_s1, 4  ;;  %s29_s14 = int_to_ptr.hbm [resolvable:$true] %s28_s14 }
   0x2   :  { %10 = vsyncpa [#allocation4], 0  ;;  %s593_s15 = smov [#allocation5]   ;;  %s15_s19 = sshll.u32 %s639_s0, 4  ;;  %s16_s19 = int_to_ptr.hbm [resolvable:$true] %s15_s19 }
   0x3   :  { %s30_s16 = sshll.u32 %s593_s15, 4  ;;  %s594_s20 = smov 128   ;;  %s31_s16 = int_to_ptr.vmem [resolvable:$true] %s30_s16 }
   0x4   :  { %s595_s21 = smov 8   ;;  %s596_s22 = smov [#allocation2]  }
   0x5   :  { %36 = dma.hbm_to_vmem [thread:$0]  %s29_s14, 2048, %s31_s16, [#allocation6], %s594_s20, %s594_s20, %s595_s21  }
   0x6   :  { %s17_s23 = sshll.u32 %s596_s22, 4  ;;  %s597_s1 = smov 64   ;;  %s18_s23 = int_to_ptr.vmem [resolvable:$true] %s17_s23 }
   0x7   :  { %s598_s24 = smov 4   ;;  %s41_s27 = sshll.u32 %s641_s2, 4  ;;  %s42_s27 = int_to_ptr.hbm [resolvable:$true] %s41_s27 }
   0x8   :  { %23 = dma.hbm_to_vmem [thread:$0]  %s16_s19, 128, %s18_s23, [#allocation3], %s597_s1, %s597_s1, %s598_s24  }
   0x9   :  { %s599_s28 = smov [#allocation7]  }
   0xa   :  { %s43_s0 = sshll.u32 %s599_s28, 4  ;;  %s44_s0 = int_to_ptr.vmem [resolvable:$true] %s43_s0 }
   0xb   :  { %49 = dma.hbm_to_vmem [thread:$0]  %s42_s27, 1024, %s44_s0, [#allocation6], %s597_s1, %s597_s1, %s598_s24  }
   0xc   :  { %587 = dma.done.wait [#allocation3], 128  }
   0xd   :  { %588 = vsyncadd [#allocation3], 4294967168 }
   0xe   :  { %589 = dma.done.wait [#allocation6], 3072  }
   0xf   :  { %590 = vsyncadd [#allocation6], 4294964224  ;;  %v409_v0 = vld [vmem:[#allocation5 + $0x70] sm:$0xf]  ;;  %v465_v1 = vld [vmem:[#allocation5 + $0x74] sm:$0xf0] }
  0x10   :  { %v401_v2 = vld [vmem:[#allocation5 + $0x60] sm:$0xf]  ;;  %v410_v3 = vor.u32 %v465_v1, %v409_v0  ;;  %v463_v4 = vld [vmem:[#allocation5 + $0x64] sm:$0xf0]  ;;  %v393_v6 = vld [vmem:[#allocation5 + $0x50] sm:$0xf] }
  0x11   :  { %v402_v5 = vor.u32 %v463_v4, %v401_v2  ;;  %v461_v7 = vld [vmem:[#allocation5 + $0x54] sm:$0xf0]  ;;  %v464_v8 = vld [vmem:[#allocation5 + $0x74] sm:$0xf]  ;;  %v411_v9 = vld [vmem:[#allocation5 + $0x78] sm:$0xf0] }
  0x12   :  { %174 = vmatpush.bf16.msra.mxu0 %v410_v3  ;;  %v414_v10 = vor.u32 %v464_v8, %v411_v9  ;;  %v462_v11 = vld [vmem:[#allocation5 + $0x64] sm:$0xf]  ;;  %v403_v12 = vld [vmem:[#allocation5 + $0x68] sm:$0xf0]  ;;  %v394_v13 = vor.u32 %v461_v7, %v393_v6  ;;  %v385_v14 = vld [vmem:[#allocation5 + $0x40] sm:$0xf] }
  0x13   :  { %v406_v15 = vor.u32 %v462_v11, %v403_v12  ;;  %v459_v16 = vld [vmem:[#allocation5 + $0x44] sm:$0xf0]  ;;  %v460_v17 = vld [vmem:[#allocation5 + $0x54] sm:$0xf]  ;;  %v395_v18 = vld [vmem:[#allocation5 + $0x58] sm:$0xf0] }
  0x14   :  { %188 = vmatpush.bf16.msra.mxu1 %v414_v10  ;;  %v386_v19 = vor.u32 %v459_v16, %v385_v14  ;;  %v377_v20 = vld [vmem:[#allocation5 + $0x30] sm:$0xf]  ;;  %v398_v21 = vor.u32 %v460_v17, %v395_v18  ;;  %v457_v22 = vld [vmem:[#allocation5 + $0x34] sm:$0xf0]  ;;  %v458_v23 = vld [vmem:[#allocation5 + $0x44] sm:$0xf] }
  0x15   :  { %v387_v24 = vld [vmem:[#allocation5 + $0x48] sm:$0xf0]  ;;  %v378_v25 = vor.u32 %v457_v22, %v377_v20  ;;  %v369_v26 = vld [vmem:[#allocation5 + $0x20] sm:$0xf]  ;;  %v455_v28 = vld [vmem:[#allocation5 + $0x24] sm:$0xf0] }
  0x16   :  { %175 = vmatpush.bf16.msra.mxu0 %v402_v5  ;;  %v390_v27 = vor.u32 %v458_v23, %v387_v24  ;;  %v456_v29 = vld [vmem:[#allocation5 + $0x34] sm:$0xf]  ;;  %v379_v30 = vld [vmem:[#allocation5 + $0x38] sm:$0xf0]  ;;  %v370_v31 = vor.u32 %v455_v28, %v369_v26  ;;  %v361_v32 = vld [vmem:[#allocation5 + $0x10] sm:$0xf] }
  0x17   :  { %v382_v33 = vor.u32 %v456_v29, %v379_v30  ;;  %v453_v34 = vld [vmem:[#allocation5 + $0x14] sm:$0xf0]  ;;  %v454_v35 = vld [vmem:[#allocation5 + $0x24] sm:$0xf]  ;;  %v371_v36 = vld [vmem:[#allocation5 + $0x28] sm:$0xf0] }
  0x18   :  { %189 = vmatpush.bf16.msra.mxu1 %v406_v15  ;;  %v362_v37 = vor.u32 %v453_v34, %v361_v32  ;;  %v353_v38 = vld [vmem:[#allocation5] sm:$0xf]  ;;  %v374_v39 = vor.u32 %v454_v35, %v371_v36  ;;  %v451_v40 = vld [vmem:[#allocation5 + $0x4] sm:$0xf0]  ;;  %v452_v41 = vld [vmem:[#allocation5 + $0x14] sm:$0xf] }
  0x19   :  { %v363_v42 = vld [vmem:[#allocation5 + $0x18] sm:$0xf0]  ;;  %v354_v43 = vor.u32 %v451_v40, %v353_v38  ;;  %v450_v45 = vld [vmem:[#allocation5 + $0x4] sm:$0xf]  ;;  %v355_v46 = vld [vmem:[#allocation5 + $0x8] sm:$0xf0] }
  0x1a   :  { %176 = vmatpush.bf16.msra.mxu0 %v394_v13  ;;  %v366_v44 = vor.u32 %v452_v41, %v363_v42  ;;  %v449_v47 = vld [vmem:[#allocation2] sm:$0xff]  ;;  %v358_v48 = vor.u32 %v450_v45, %v355_v46  ;;  %v472_v50 = vld [vmem:[#allocation7 + $0x30] sm:$0xff]  ;;  %v471_v51 = vld [vmem:[#allocation7 + $0x28] sm:$0xff]  ;;  %s600_s2 = smov [#allocation8]   ;;  %s333_s5 = sshll.u32 %s642_s3, 4  ;;  %s334_s5 = int_to_ptr.hbm [resolvable:$true] %s333_s5 }
  0x1b   :  { %v473_v49 = vld [vmem:[#allocation7 + $0x38] sm:$0xff]  ;;  %v470_v52 = vld [vmem:[#allocation7 + $0x20] sm:$0xff]  ;;  %v468_v54 = vld [vmem:[#allocation7 + $0x10] sm:$0xff]  ;;  %s331_s29 = sshll.u32 %s600_s2, 4  ;;  %s332_s29 = int_to_ptr.vmem [resolvable:$true] %s331_s29 }
  0x1c   :  { %190 = vmatpush.bf16.msra.mxu1 %v398_v21  ;;  %309 = vmatpush.bf16.msra.mxu2 %v473_v49  ;;  %v469_v53 = vld [vmem:[#allocation7 + $0x18] sm:$0xff]  ;;  %v467_v57 = vld [vmem:[#allocation7 + $0x8] sm:$0xff]  ;;  %v466_v58 = vld [vmem:[#allocation7] sm:$0xff] }
  0x1e   :  { %177 = vmatpush.bf16.msra.mxu0 %v386_v19 }
  0x20   :  { %191 = vmatpush.bf16.msra.mxu1 %v390_v27  ;;  %310 = vmatpush.bf16.msra.mxu2 %v472_v50 }
  0x22   :  { %178 = vmatpush.bf16.msra.mxu0 %v378_v25 }
  0x24   :  { %192 = vmatpush.bf16.msra.mxu1 %v382_v33  ;;  %311 = vmatpush.bf16.msra.mxu2 %v471_v51 }
  0x26   :  { %179 = vmatpush.bf16.msra.mxu0 %v370_v31 }
  0x28   :  { %193 = vmatpush.bf16.msra.mxu1 %v374_v39  ;;  %312 = vmatpush.bf16.msra.mxu2 %v470_v52 }
  0x2a   :  { %180 = vmatpush.bf16.msra.mxu0 %v362_v37 }
  0x2c   :  { %194 = vmatpush.bf16.msra.mxu1 %v366_v44  ;;  %313 = vmatpush.bf16.msra.mxu2 %v469_v53 }
  0x2e   :  { %181 = vmatpush.bf16.msra.mxu0 %v354_v43 }
  0x30   :  { %195 = vmatpush.bf16.msra.mxu1 %v358_v48  ;;  %314 = vmatpush.bf16.msra.mxu2 %v468_v54 }
  0x31   :  { %182 = vmatmul.bf16.vlgmr.msra.gmra.mxu0 %v449_v47 }
  0x33   :  { %196 = vmatmul.bf16.vlgmr.msra.gmra.mxu1 %v449_v47 }
  0x34   :  { %315 = vmatpush.bf16.msra.mxu2 %v467_v57 }
  0x38   :  { %316 = vmatpush.bf16.msra.mxu2 %v466_v58 }
  0xae   :  { %v183_v55 = vpop.f32.mrf.mxu0 }
  0xaf   :  { %v415_v56 = vmul.f32 -1.442695, %v183_v55 }
  0xb0   :  { %v197_v10 = vpop.f32.mrf.mxu1 }
  0xb1   :  { %483 = vpow2.f32 %v415_v56 }
  0xb6   :  { %v185_v59 = vpop.f32.mrf.mxu0 }
  0xb7   :  { %v484_v60 = vpop.eup %483  ;;  %v416_v61 = vmul.f32 -1.442695, %v185_v59 }
  0xb8   :  { %v208_v62 = vadd.f32 1.0, %v484_v60  ;;  %v199_v24 = vpop.f32.mrf.mxu1 }
  0xb9   :  { %485 = vpow2.f32 %v416_v61 }
  0xba   :  { %487 = vrcp.f32 %v208_v62  ;;  %v221_v7 = vand.u32 2147483648, %v208_v62  ;;  %vm215_vm1 = vweird.f32 %v208_v62  ;;  %v219_v8 = vand.u32 2147483647, %v208_v62 }
  0xbc   :  { %v222_v13 = vor.u32 1.1754944e-38, %v221_v7  ;;  %vm220_vm3 = vcmp.eq.f32.partialorder %v219_v8, 8.507059e+37 }
  0xbf   :  { %v486_v63 = vpop.eup %485 }
  0xc0   :  { %v488_v0 = vpop.eup %487  ;;  %v209_v1 = vadd.f32 1.0, %v486_v63 }
  0xc1   :  { %v211_v2 = vmul.f32 %v488_v0, %v208_v62  ;;  %vm216_vm0 = vweird.f32 %v488_v0 }
  0xc2   :  { %489 = vrcp.f32 %v209_v1  ;;  %vm217_vm2 = vmor %vm215_vm1, %vm216_vm0  ;;  %v236_v14 = vand.u32 2147483648, %v209_v1  ;;  %v234_v16 = vand.u32 2147483647, %v209_v1  ;;  %vm230_vm5 = vweird.f32 %v209_v1 }
  0xc3   :  { %v212_v3 = vsub.f32 1.0, %v211_v2 }
  0xc4   :  { %v237_v19 = vor.u32 1.1754944e-38, %v236_v14  ;;  %vm235_vm7 = vcmp.eq.f32.partialorder %v234_v16, 8.507059e+37 }
  0xc5   :  { %v213_v4 = vmul.f32 %v488_v0, %v212_v3 }
  0xc7   :  { %v214_v5 = vadd.f32 %v488_v0, %v213_v4 }
  0xc8   :  { %v490_v6 = vpop.eup %489 }
  0xc9   :  { %v226_v9 = vmul.f32 %v490_v6, %v209_v1  ;;  %v218_v11 = vsel %vm217_vm2, %v488_v0, %v214_v5  ;;  %vm231_vm4 = vweird.f32 %v490_v6 }
  0xca   :  { %v223_v17 = vsel %vm220_vm3, %v222_v13, %v218_v11  ;;  %vm232_vm6 = vmor %vm230_vm5, %vm231_vm4 }
  0xcb   :  { %v227_v12 = vsub.f32 1.0, %v226_v9  ;;  %v240_v20 = vmul.f32 %v223_v17, %v183_v55 }
  0xcd   :  { %v228_v15 = vmul.f32 %v490_v6, %v227_v12  ;;  %v242_v25 = vmul.f32 %v240_v20, %v197_v10 }
  0xcf   :  { %v229_v18 = vadd.f32 %v490_v6, %v228_v15 }
  0xd1   :  { %v233_v21 = vsel %vm232_vm6, %v490_v6, %v229_v18 }
  0xd2   :  { %v238_v22 = vsel %vm235_vm7, %v237_v19, %v233_v21 }
  0xd3   :  { %v241_v23 = vmul.f32 %v238_v22, %v185_v59 }
  0xd5   :  { %v243_v26 = vmul.f32 %v241_v23, %v199_v24 }
  0xd7   :  { %v244_v27 = vpack.c.bf16 %v243_v26, %v242_v25 }
  0xd9   :  { %317 = vmatmul.bf16.vlgmr.msra.gmra.mxu2 %v244_v27 }
 0x15c   :  { %v318_v28 = vpop.f32.mrf.mxu2 }
 0x15d   :  { %325 = vst [vmem:[#allocation8] sm:$0xff] %v318_v28 }
 0x164   :  { %v320_v29 = vpop.f32.mrf.mxu2 }
 0x165   :  { %326 = vst [vmem:[#allocation8 + $0x8] sm:$0xff] %v320_v29 }
 0x166   :  { %339 = dma.vmem_to_hbm [thread:$0]  %s332_s29, 256, %s334_s5, [#allocation4], %s594_s20, %s594_s20, %s595_s21  }
 0x167   :  { %591 = dma.done.wait [#allocation4], 256  }
 0x168   :  { %592 = vsyncadd [#allocation4], 4294967040 }
 0x169   :  { %344 = vsyncpa [#allocation3], 1 }
 0x16a   :  { %345 = vsyncpa [#allocation6], 1 }
 0x16b   :  { %346 = vsyncpa [#allocation4], 1 }

</bundles_post_ra>
